<compile_context>
chip_gen: v7x
topology: tpu7x:2x2x1
jax: 0.10.0
libtpu: 0.0.40
codegen_flags: <defaults>
</compile_context>

<pallas_src>
import math
import jax
import jax.numpy as jnp
from jax.experimental import pallas as pl
from jax.experimental.pallas import tpu as pltpu


def _gelu_new(x):
    # HuggingFace / TransformerLens "gelu_new":
    # 0.5 * x * (1 + tanh(sqrt(2/pi) * (x + 0.044715 * x^3)))
    c = math.sqrt(2.0 / math.pi)
    return 0.5 * x * (1.0 + jnp.tanh(c * (x + 0.044715 * x * x * x)))


def _mlp_kernel(x_ref, w_in_ref, b_in_ref, w_out_ref, b_out_ref, o_ref, acc_ref):
    k = pl.program_id(1)

    @pl.when(k == 0)
    def _():
        acc_ref[...] = jnp.zeros_like(acc_ref)

    # pre = x @ W_in[:, k_tile] + b_in[k_tile]     (f32 accumulation)
    pre = jnp.dot(x_ref[...], w_in_ref[...],
                  preferred_element_type=jnp.float32)
    pre = pre + b_in_ref[...]            # b_in is f32
    post = _gelu_new(pre)                # f32 elementwise / EUP tanh

    # Accumulate post @ W_out[k_tile, :] into the f32 scratch.
    acc_ref[...] += jnp.dot(post.astype(w_out_ref.dtype), w_out_ref[...],
                            preferred_element_type=jnp.float32)

    @pl.when(k == pl.num_programs(1) - 1)
    def _():
        o_ref[...] = (acc_ref[...] + b_out_ref[...]).astype(o_ref.dtype)


def _pick_tile(total, preferred, quantum):
    """Largest t <= preferred with total % t == 0 and t % quantum == 0, else total."""
    t = min(preferred, total)
    t = (t // quantum) * quantum
    while t >= quantum:
        if total % t == 0:
            return t
        t -= quantum
    return total


def mlp_forward(x, W_in, b_in, W_out, b_out,
                mask_W_in=None, mask_b_in=None,
                mask_W_out=None, mask_b_out=None,
                row_tile=None, mlp_tile=None, compute_dtype=None):
    """x: [batch, position, d_model] -> [batch, position, d_model]."""
    batch, pos, d_model = x.shape
    d_mlp = W_in.shape[1]
    M = batch * pos
    out_dtype = x.dtype

    # Fold the (optional) weight masks ONCE, outside the kernel.
    if mask_W_in is not None:
        W_in = W_in * mask_W_in
    if mask_b_in is not None:
        b_in = b_in * mask_b_in
    if mask_W_out is not None:
        W_out = W_out * mask_W_out
    if mask_b_out is not None:
        b_out = b_out * mask_b_out

    # Optional low-precision matmul operands; biases/accumulation stay f32.
    if compute_dtype is not None:
        x = x.astype(compute_dtype)
        W_in = W_in.astype(compute_dtype)
        W_out = W_out.astype(compute_dtype)

    x2d = x.reshape(M, d_model)
    b_in2d = b_in.astype(jnp.float32).reshape(1, d_mlp)
    b_out2d = b_out.astype(jnp.float32).reshape(1, d_model)

    tm = row_tile if row_tile is not None else _pick_tile(M, 256, 8)
    tf = mlp_tile if mlp_tile is not None else _pick_tile(d_mlp, 512, 128)
    assert M % tm == 0, f"row tile {tm} must divide batch*position={M}"
    assert d_mlp % tf == 0, f"d_mlp tile {tf} must divide d_mlp={d_mlp}"

    grid = (M // tm, d_mlp // tf)

    itemsize = lambda a: a.size * a.dtype.itemsize
    cost = pl.CostEstimate(
        flops=4 * M * d_model * d_mlp,              # two matmuls
        transcendentals=M * d_mlp,                  # tanh in gelu_new
        bytes_accessed=(itemsize(x2d) + itemsize(W_in) + itemsize(W_out)
                        + itemsize(b_in2d) + itemsize(b_out2d)
                        + M * d_model * jnp.dtype(out_dtype).itemsize),
    )

    out2d = pl.pallas_call(
        _mlp_kernel,
        out_shape=jax.ShapeDtypeStruct((M, d_model), out_dtype),
        grid_spec=pltpu.PrefetchScalarGridSpec(
            num_scalar_prefetch=0,
            grid=grid,
            in_specs=[
                pl.BlockSpec((tm, d_model), lambda i, k: (i, 0)),   # x rows
                pl.BlockSpec((d_model, tf), lambda i, k: (0, k)),   # W_in tile
                pl.BlockSpec((1, tf),       lambda i, k: (0, k)),   # b_in tile
                pl.BlockSpec((tf, d_model), lambda i, k: (k, 0)),   # W_out tile
                pl.BlockSpec((1, d_model),  lambda i, k: (0, 0)),   # b_out
            ],
            out_specs=pl.BlockSpec((tm, d_model), lambda i, k: (i, 0)),
            scratch_shapes=[pltpu.VMEM((tm, d_model), jnp.float32)],  # accumulator
        ),
        compiler_params=pltpu.CompilerParams(
            dimension_semantics=("parallel", "arbitrary"),
            vmem_limit_bytes=32 * 1024 * 1024,
        ),
        cost_estimate=cost,
    )(x2d, W_in, b_in2d, W_out, b_out2d)

    return out2d.reshape(batch, pos, d_model)


def _reference(x, W_in, b_in, W_out, b_out):
    pre = jnp.einsum("bpm,mf->bpf", x, W_in) + b_in
    post = _gelu_new(pre)
    return jnp.einsum("bpf,fm->bpm", post, W_out) + b_out


if __name__ == "__main__":
    # Small config consistent with the module's shape conventions.
    batch, pos = 2, 8
    d_model, d_mlp = 128, 256
    init_range = 0.02

    key = jax.random.PRNGKey(0)
    k_x, k_win, k_wout, k_m1, k_m2 = jax.random.split(key, 5)

    x = jax.random.normal(k_x, (batch, pos, d_model), dtype=jnp.float32)
    W_in = init_range * jax.random.normal(k_win, (d_model, d_mlp), jnp.float32)
    b_in = 0.01 * jnp.ones((d_mlp,), jnp.float32)
    W_out = init_range * jax.random.normal(k_wout, (d_mlp, d_model), jnp.float32)
    b_out = 0.01 * jnp.ones((d_model,), jnp.float32)

    # --- unmasked path (weight_mask=False) ---
    out = mlp_forward(x, W_in, b_in, W_out, b_out)
    out = jax.block_until_ready(out)
    ref = _reference(x, W_in, b_in, W_out, b_out)
    assert out.shape == (batch, pos, d_model)
    assert jnp.allclose(out, ref, atol=1e-5, rtol=1e-5)

    # --- masked path (weight_mask=True): masks folded once in the wrapper ---
    mask_W_in = (jax.random.uniform(k_m1, W_in.shape) > 0.5).astype(jnp.float32)
    mask_W_out = (jax.random.uniform(k_m2, W_out.shape) > 0.5).astype(jnp.float32)
    mask_b_in = jnp.ones_like(b_in)
    mask_b_out = jnp.zeros_like(b_out)
    out_m = mlp_forward(x, W_in, b_in, W_out, b_out,
                        mask_W_in, mask_b_in, mask_W_out, mask_b_out)
    out_m = jax.block_until_ready(out_m)
    ref_m = _reference(x, W_in * mask_W_in, b_in * mask_b_in,
                       W_out * mask_W_out, b_out * mask_b_out)
    assert jnp.allclose(out_m, ref_m, atol=1e-5, rtol=1e-5)

    # --- bf16-weight fast path (f32 accumulation + f32 gelu/bias) ---
    out_bf = mlp_forward(x, W_in, b_in, W_out, b_out, compute_dtype=jnp.bfloat16)
    out_bf = jax.block_until_ready(out_bf)
    assert jnp.allclose(out_bf.astype(jnp.float32), ref, atol=1e-2, rtol=1e-1)

    print("KERNEL_OK")
</pallas_src>

<mosaic_0001>
module attributes {stable_mosaic.version = 11 : i64} {
  func.func @_mlp_kernel(%arg0: i32, %arg1: i32, %arg2: memref<16x128xf32, #tpu.memory_space<vmem>>, %arg3: memref<128x256xf32, #tpu.memory_space<vmem>>, %arg4: memref<1x256xf32, #tpu.memory_space<vmem>>, %arg5: memref<256x128xf32, #tpu.memory_space<vmem>>, %arg6: memref<1x128xf32, #tpu.memory_space<vmem>>, %arg7: memref<16x128xf32, #tpu.memory_space<vmem>>, %arg8: memref<16x128xf32, #tpu.memory_space<vmem>>) attributes {dimension_semantics = [#tpu.dimension_semantics<parallel>, #tpu.dimension_semantics<arbitrary>], iteration_bounds = array<i64: 1, 1>, scalar_prefetch = 0 : i64, scratch_operands = 1 : i64, tpu.core_type = #tpu.core_type<tc>, window_params = [{transform_indices = @transform_0, window_bounds = array<i64: 16, 128>}, {transform_indices = @transform_1, window_bounds = array<i64: 128, 256>}, {transform_indices = @transform_2, window_bounds = array<i64: 1, 256>}, {transform_indices = @transform_3, window_bounds = array<i64: 256, 128>}, {pipeline_mode = #tpu.pipeline_mode<synchronous>, transform_indices = @transform_4, window_bounds = array<i64: 1, 128>}, {transform_indices = @transform_5, window_bounds = array<i64: 16, 128>}]} {
    %c0_i32 = arith.constant 0 : i32
    %0 = arith.cmpi eq, %arg1, %c0_i32 : i32
    %1 = arith.extui %0 : i1 to i32
    %c0_i32_0 = arith.constant 0 : i32
    %2 = arith.cmpi ne, %1, %c0_i32_0 : i32
    scf.if %2 {
      %cst_19 = arith.constant 0.000000e+00 : f32
      %30 = vector.broadcast %cst_19 : f32 to vector<16x128xf32>
      %c0_20 = arith.constant 0 : index
      %c0_21 = arith.constant 0 : index
      %31 = vector.load %arg8[%c0_20, %c0_21] : memref<16x128xf32, #tpu.memory_space<vmem>>, vector<16x128xf32>
      tpu.vector_store %arg8[%c0_20, %c0_21], %30 {strides = array<i32>} : memref<16x128xf32, #tpu.memory_space<vmem>>, vector<16x128xf32>,
    } else {
    }
    %c0 = arith.constant 0 : index
    %c0_1 = arith.constant 0 : index
    %3 = vector.load %arg2[%c0, %c0_1] : memref<16x128xf32, #tpu.memory_space<vmem>>, vector<16x128xf32>
    %c0_2 = arith.constant 0 : index
    %c0_3 = arith.constant 0 : index
    %4 = vector.load %arg3[%c0_2, %c0_3] : memref<128x256xf32, #tpu.memory_space<vmem>>, vector<128x256xf32>
    %cst = arith.constant dense<0.000000e+00> : vector<16x256xf32>
    %5 = tpu.matmul %3, %4, %cst {dimension_numbers = #tpu.dot_dimension_numbers<[1], [0], [0], [1], [0, 0, 1, 1], [], []>} : vector<16x128xf32>, vector<128x256xf32>, vector<16x256xf32> -> vector<16x256xf32>
    %c0_4 = arith.constant 0 : index
    %c0_5 = arith.constant 0 : index
    %6 = vector.load %arg4[%c0_4, %c0_5] : memref<1x256xf32, #tpu.memory_space<vmem>>, vector<1x256xf32>
    %7 = vector.broadcast %6 : vector<1x256xf32> to vector<16x256xf32>
    %8 = arith.addf %5, %7 : vector<16x256xf32>
    %cst_6 = arith.constant 5.000000e-01 : f32
    %9 = vector.broadcast %cst_6 : f32 to vector<16x256xf32>
    %10 = arith.mulf %9, %8 : vector<16x256xf32>
    %cst_7 = arith.constant 4.471500e-02 : f32
    %11 = vector.broadcast %cst_7 : f32 to vector<16x256xf32>
    %12 = arith.mulf %11, %8 : vector<16x256xf32>
    %13 = arith.mulf %12, %8 : vector<16x256xf32>
    %14 = arith.mulf %13, %8 : vector<16x256xf32>
    %15 = arith.addf %8, %14 : vector<16x256xf32>
    %cst_8 = arith.constant 0.797884583 : f32
    %16 = vector.broadcast %cst_8 : f32 to vector<16x256xf32>
    %17 = arith.mulf %16, %15 : vector<16x256xf32>
    %18 = math.tanh %17 : vector<16x256xf32>
    %cst_9 = arith.constant 1.000000e+00 : f32
    %19 = vector.broadcast %cst_9 : f32 to vector<16x256xf32>
    %20 = arith.addf %19, %18 : vector<16x256xf32>
    %21 = arith.mulf %10, %20 : vector<16x256xf32>
    %c0_10 = arith.constant 0 : index
    %c0_11 = arith.constant 0 : index
    %22 = vector.load %arg8[%c0_10, %c0_11] : memref<16x128xf32, #tpu.memory_space<vmem>>, vector<16x128xf32>
    %c0_12 = arith.constant 0 : index
    %c0_13 = arith.constant 0 : index
    %23 = vector.load %arg5[%c0_12, %c0_13] : memref<256x128xf32, #tpu.memory_space<vmem>>, vector<256x128xf32>
    %cst_14 = arith.constant dense<0.000000e+00> : vector<16x128xf32>
    %24 = tpu.matmul %21, %23, %cst_14 {dimension_numbers = #tpu.dot_dimension_numbers<[1], [0], [0], [1], [0, 0, 1, 1], [], []>} : vector<16x256xf32>, vector<256x128xf32>, vector<16x128xf32> -> vector<16x128xf32>
    %25 = arith.addf %22, %24 : vector<16x128xf32>
    %c0_15 = arith.constant 0 : index
    %c0_16 = arith.constant 0 : index
    %26 = vector.load %arg8[%c0_15, %c0_16] : memref<16x128xf32, #tpu.memory_space<vmem>>, vector<16x128xf32>
    tpu.vector_store %arg8[%c0_15, %c0_16], %25 {strides = array<i32>} : memref<16x128xf32, #tpu.memory_space<vmem>>, vector<16x128xf32>,
    %c0_i32_17 = arith.constant 0 : i32
    %27 = arith.cmpi eq, %arg1, %c0_i32_17 : i32
    %28 = arith.extui %27 : i1 to i32
    %c0_i32_18 = arith.constant 0 : i32
    %29 = arith.cmpi ne, %28, %c0_i32_18 : i32
    scf.if %29 {
      %c0_19 = arith.constant 0 : index
      %c0_20 = arith.constant 0 : index
      %30 = vector.load %arg8[%c0_19, %c0_20] : memref<16x128xf32, #tpu.memory_space<vmem>>, vector<16x128xf32>
      %c0_21 = arith.constant 0 : index
      %c0_22 = arith.constant 0 : index
      %31 = vector.load %arg6[%c0_21, %c0_22] : memref<1x128xf32, #tpu.memory_space<vmem>>, vector<1x128xf32>
      %32 = vector.broadcast %31 : vector<1x128xf32> to vector<16x128xf32>
      %33 = arith.addf %30, %32 : vector<16x128xf32>
      %c0_23 = arith.constant 0 : index
      %c0_24 = arith.constant 0 : index
      %34 = vector.load %arg7[%c0_23, %c0_24] : memref<16x128xf32, #tpu.memory_space<vmem>>, vector<16x128xf32>
      tpu.vector_store %arg7[%c0_23, %c0_24], %33 {strides = array<i32>} : memref<16x128xf32, #tpu.memory_space<vmem>>, vector<16x128xf32>,
    } else {
    }
    return
  }
  func.func @transform_0(%arg0: i32, %arg1: i32) -> (i32, i32) {
    %c0_i32 = arith.constant 0 : i32
    %c0_i32_0 = arith.constant 0 : i32
    return %arg0, %c0_i32 : i32, i32
  }
  func.func @transform_1(%arg0: i32, %arg1: i32) -> (i32, i32) {
    %c0_i32 = arith.constant 0 : i32
    %c0_i32_0 = arith.constant 0 : i32
    return %c0_i32, %arg1 : i32, i32
  }
  func.func @transform_2(%arg0: i32, %arg1: i32) -> (i32, i32) {
    %c0_i32 = arith.constant 0 : i32
    %c0_i32_0 = arith.constant 0 : i32
    return %c0_i32, %arg1 : i32, i32
  }
  func.func @transform_3(%arg0: i32, %arg1: i32) -> (i32, i32) {
    %c0_i32 = arith.constant 0 : i32
    %c0_i32_0 = arith.constant 0 : i32
    return %arg1, %c0_i32 : i32, i32
  }
  func.func @transform_4(%arg0: i32, %arg1: i32) -> (i32, i32) {
    %c0_i32 = arith.constant 0 : i32
    %c0_i32_0 = arith.constant 0 : i32
    %c0_i32_1 = arith.constant 0 : i32
    return %c0_i32, %c0_i32_0 : i32, i32
  }
  func.func @transform_5(%arg0: i32, %arg1: i32) -> (i32, i32) {
    %c0_i32 = arith.constant 0 : i32
    %c0_i32_0 = arith.constant 0 : i32
    return %arg0, %c0_i32 : i32, i32
  }
}

</mosaic_0001>

<bundles_post_ra>
// kernel: tpu_custom_call.1
= control target key start
LH: loop header
LB: loop body
LE: loop exit
PB: predicated region body
PF: predicated region fallthrough
CT: control target
= control target key end

     0   :  { %10 = vsyncpa [#allocation4], 0  ;;  %s692_s0 = inlined_call_operand.hbm [shape: f32[16,128], index: 0, kind: input, shape index: {}]   ;;  %s693_s1 = inlined_call_operand.hbm [shape: f32[128,256], index: 1, kind: input, shape index: {}]   ;;  %s694_s2 = inlined_call_operand.vmem [shape: f32[1,256], index: 2, kind: input, shape index: {}]   ;;  %s695_s3 = inlined_call_operand.hbm [shape: f32[256,128], index: 3, kind: input, shape index: {}]   ;;  %s696_s4 = inlined_call_operand.vmem [shape: f32[1,128], index: 4, kind: input, shape index: {}]   ;;  %s697_s5 = inlined_call_operand.hbm [shape: f32[16,128], index: 5, kind: output, shape index: {}]  }
   0x1   :  { %11 = vsyncpa [#allocation7], 0 }
   0x2   :  { %12 = vsyncpa [#allocation5], 0  ;;  %s588_s18 = smov [#allocation6]   ;;  %s494_s22 = scalar_lea.hbm %s693_s1, 4096 }
   0x3   :  { %s30_s19 = sshll.u32 %s588_s18, 4  ;;  %p495_p0 = scmp.ne.s32.totalorder %s693_s1, %s494_s22  ;;  %s31_s19 = int_to_ptr.vmem [resolvable:$true] %s30_s19 }
   0x4   :  { %p498_p1 = scmp.lt.u32.totalorder %s494_s22, %s693_s1 }
   0x6   :  { %p500_p2 = pnand %p498_p1, %p495_p0 }
   0x8   :  { %503 = shalt.err (!%p500_p2)
}
   0x9   :  { %s504_s27 = scalar_lea.vmem %s31_s19, 4096  ;;  %p509_p4 = scmp.lt.s32.totalorder %s31_s19, %s31_s19 }
   0xa   :  { %p505_p3 = scmp.ne.s32.totalorder %s31_s19, %s504_s27  ;;  %p510_p5 = scmp.lt.s32.totalorder %s504_s27, %s504_s27 }
   0xc   :  { %p511_p6 = por %p510_p5, %p509_p4 }
   0xe   :  { %p512_p7 = pnand %p511_p6, %p505_p3 }
  0x10   :  { %515 = shalt.err (!%p512_p7)
}
  0x11   :  { %s589_s28 = smov 256   ;;  %s590_s29 = smov 16  }
  0x12   :  { %36 = dma.hbm_to_vmem [thread:$0]  %s693_s1, 4096, %s31_s19, [#allocation7], %s589_s28, %s589_s28, %s590_s29  }
  0x13   :  { %s591_s7 = smov [#allocation3]   ;;  %s516_s11 = scalar_lea.hbm %s692_s0, 256 }
  0x14   :  { %s18_s8 = sshll.u32 %s591_s7, 4  ;;  %p517_p8 = scmp.ne.s32.totalorder %s692_s0, %s516_s11  ;;  %s19_s8 = int_to_ptr.vmem [resolvable:$true] %s18_s8 }
  0x15   :  { %p520_p9 = scmp.lt.u32.totalorder %s516_s11, %s692_s0 }
  0x17   :  { %p522_p10 = pnand %p520_p9, %p517_p8 }
  0x19   :  { %525 = shalt.err (!%p522_p10)
}
  0x1a   :  { %s526_s16 = scalar_lea.vmem %s19_s8, 256  ;;  %p531_p12 = scmp.lt.s32.totalorder %s19_s8, %s19_s8 }
  0x1b   :  { %p527_p11 = scmp.ne.s32.totalorder %s19_s8, %s526_s16  ;;  %p532_p13 = scmp.lt.s32.totalorder %s526_s16, %s526_s16 }
  0x1d   :  { %p533_p0 = por %p532_p13, %p531_p12 }
  0x1f   :  { %p534_p1 = pnand %p533_p0, %p527_p11 }
  0x21   :  { %537 = shalt.err (!%p534_p1)
}
  0x22   :  { %s592_s1 = smov 128   ;;  %s593_s17 = smov 8  }
  0x23   :  { %24 = dma.hbm_to_vmem [thread:$0]  %s692_s0, 256, %s19_s8, [#allocation4], %s592_s1, %s592_s1, %s593_s17  }
  0x24   :  { %s594_s20 = smov [#allocation8]   ;;  %s538_s24 = scalar_lea.hbm %s695_s3, 4096 }
  0x25   :  { %s44_s21 = sshll.u32 %s594_s20, 4  ;;  %p539_p2 = scmp.ne.s32.totalorder %s695_s3, %s538_s24  ;;  %s45_s21 = int_to_ptr.vmem [resolvable:$true] %s44_s21 }
  0x26   :  { %p542_p3 = scmp.lt.u32.totalorder %s538_s24, %s695_s3 }
  0x28   :  { %p544_p4 = pnand %p542_p3, %p539_p2 }
  0x2a   :  { %547 = shalt.err (!%p544_p4)
}
  0x2b   :  { %s548_s29 = scalar_lea.vmem %s45_s21, 4096  ;;  %p553_p6 = scmp.lt.s32.totalorder %s45_s21, %s45_s21 }
  0x2c   :  { %p549_p5 = scmp.ne.s32.totalorder %s45_s21, %s548_s29  ;;  %p554_p7 = scmp.lt.s32.totalorder %s548_s29, %s548_s29 }
  0x2e   :  { %p555_p8 = por %p554_p7, %p553_p6 }
  0x30   :  { %p556_p9 = pnand %p555_p8, %p549_p5 }
  0x32   :  { %559 = shalt.err (!%p556_p9)
}
  0x33   :  { %50 = dma.hbm_to_vmem [thread:$0]  %s695_s3, 4096, %s45_s21, [#allocation7], %s592_s1, %s592_s1, %s593_s17  }
  0x34   :  { %582 = dma.done.wait [#allocation4], 256  }
  0x35   :  { %583 = vsyncadd [#allocation4], 4294967040 }
  0x36   :  { %584 = dma.done.wait [#allocation7], 8192  }
  0x37   :  { %585 = vsyncadd [#allocation7], 4294959104  ;;  %v595_v0 = vmov 0.0   ;;  %v71_v1 = vld [vmem:[#allocation6 + $0x8] sm:$0xff]  ;;  %v73_v2 = vld [vmem:[#allocation6 + $0x18] sm:$0xff]  ;;  %s596_s8 = smov [#allocation9]  }
  0x38   :  { %178 = vmatprep.mubr.f32.mxu0 %v595_v0  ;;  %v70_v3 = vld [vmem:[#allocation6] sm:$0xff]  ;;  %v413_v4 = vpack.c.bf16 %v73_v2, %v71_v1  ;;  %v72_v5 = vld [vmem:[#allocation6 + $0x10] sm:$0xff]  ;;  %v75_v6 = vld [vmem:[#allocation6 + $0x28] sm:$0xff]  ;;  %s361_s9 = sshll.u32 %s596_s8, 4  ;;  %s362_s9 = int_to_ptr.vmem [resolvable:$true] %s361_s9 }
  0x39   :  { %v77_v7 = vld [vmem:[#allocation6 + $0x38] sm:$0xff]  ;;  %v415_v8 = vpack.c.bf16 %v72_v5, %v70_v3  ;;  %v74_v10 = vld [vmem:[#allocation6 + $0x20] sm:$0xff]  ;;  %v76_v11 = vld [vmem:[#allocation6 + $0x30] sm:$0xff]  ;;  %s560_s10 = scalar_lea.vmem %s362_s9, 256  ;;  %p565_p11 = scmp.lt.s32.totalorder %s362_s9, %s362_s9 }
  0x3a   :  { %v417_v9 = vpack.c.bf16 %v77_v7, %v75_v6  ;;  %v79_v12 = vld [vmem:[#allocation6 + $0x48] sm:$0xff]  ;;  %414 = vmatprep.subr.bf16.mxu0 %v413_v4  ;;  %v81_v13 = vld [vmem:[#allocation6 + $0x58] sm:$0xff]  ;;  %v419_v14 = vpack.c.bf16 %v76_v11, %v74_v10  ;;  %v78_v16 = vld [vmem:[#allocation6 + $0x40] sm:$0xff]  ;;  %p561_p10 = scmp.ne.s32.totalorder %s362_s9, %s560_s10  ;;  %p566_p12 = scmp.lt.s32.totalorder %s560_s10, %s560_s10 }
  0x3b   :  { %416 = vmatpush1.bf16.msra.mxu0 %v415_v8  ;;  %v421_v15 = vpack.c.bf16 %v81_v13, %v79_v12  ;;  %v80_v17 = vld [vmem:[#allocation6 + $0x50] sm:$0xff]  ;;  %v83_v18 = vld [vmem:[#allocation6 + $0x68] sm:$0xff]  ;;  %v85_v19 = vld [vmem:[#allocation6 + $0x78] sm:$0xff] }
  0x3c   :  { %418 = vmatprep.subr.bf16.mxu0 %v417_v9  ;;  %v423_v20 = vpack.c.bf16 %v80_v17, %v78_v16  ;;  %v425_v21 = vpack.c.bf16 %v85_v19, %v83_v18  ;;  %v82_v22 = vld [vmem:[#allocation6 + $0x60] sm:$0xff]  ;;  %v84_v23 = vld [vmem:[#allocation6 + $0x70] sm:$0xff]  ;;  %v87_v24 = vld [vmem:[#allocation6 + $0x88] sm:$0xff]  ;;  %p567_p13 = por %p566_p12, %p565_p11 }
  0x3d   :  { %v89_v25 = vld [vmem:[#allocation6 + $0x98] sm:$0xff]  ;;  %v245_v26 = vld [vmem:[#allocation8 + $0x80] sm:$0xff]  ;;  %v246_v27 = vld [vmem:[#allocation8 + $0x88] sm:$0xff]  ;;  %v427_v28 = vpack.c.bf16 %v84_v23, %v82_v22 }
  0x3e   :  { %v445_v29 = vpack.c.bf16 %v246_v27, %v245_v26  ;;  %v229_v30 = vld [vmem:[#allocation8] sm:$0xff]  ;;  %v230_v31 = vld [vmem:[#allocation8 + $0x8] sm:$0xff]  ;;  %v429_v32 = vpack.c.bf16 %v89_v25, %v87_v24  ;;  %v88_v34 = vld [vmem:[#allocation6 + $0x90] sm:$0xff]  ;;  %p568_p0 = pnand %p567_p13, %p561_p10 }
  0x3f   :  { %420 = vmatpush1.bf16.msra.mxu0 %v419_v14  ;;  %v86_v33 = vld [vmem:[#allocation6 + $0x80] sm:$0xff]  ;;  %v447_v35 = vpack.c.bf16 %v230_v31, %v229_v30  ;;  %v91_v36 = vld [vmem:[#allocation6 + $0xa8] sm:$0xff]  ;;  %v93_v37 = vld [vmem:[#allocation6 + $0xb8] sm:$0xff] }
  0x40   :  { %422 = vmatprep.subr.bf16.mxu0 %v421_v15  ;;  %446 = vmatprep.subr.bf16.mxu1 %v445_v29  ;;  %v431_v38 = vpack.c.bf16 %v88_v34, %v86_v33  ;;  %v433_v39 = vpack.c.bf16 %v93_v37, %v91_v36  ;;  %v90_v40 = vld [vmem:[#allocation6 + $0xa0] sm:$0xff]  ;;  %v92_v41 = vld [vmem:[#allocation6 + $0xb0] sm:$0xff]  ;;  %v95_v42 = vld [vmem:[#allocation6 + $0xc8] sm:$0xff] }
  0x41   :  { %448 = vmatpush3.bf16.msra.mxu1 %v447_v35  ;;  %v97_v43 = vld [vmem:[#allocation6 + $0xd8] sm:$0xff]  ;;  %v435_v44 = vpack.c.bf16 %v92_v41, %v90_v40  ;;  %v94_v46 = vld [vmem:[#allocation6 + $0xc0] sm:$0xff]  ;;  %v96_v47 = vld [vmem:[#allocation6 + $0xd0] sm:$0xff]  ;;  %v104_v35 = vlaneseq }
  0x42   :  { %v437_v45 = vpack.c.bf16 %v97_v43, %v95_v42  ;;  %v99_v48 = vld [vmem:[#allocation6 + $0xe8] sm:$0xff]  ;;  %v101_v49 = vld [vmem:[#allocation6 + $0xf8] sm:$0xff]  ;;  %v439_v50 = vpack.c.bf16 %v96_v47, %v94_v46  ;;  %v98_v52 = vld [vmem:[#allocation6 + $0xe0] sm:$0xff] }
  0x43   :  { %424 = vmatpush1.bf16.msra.mxu0 %v423_v20  ;;  %v441_v51 = vpack.c.bf16 %v101_v49, %v99_v48  ;;  %v100_v53 = vld [vmem:[#allocation6 + $0xf0] sm:$0xff]  ;;  %v69_v56 = vld [vmem:[#allocation3 + $0x8] sm:$0xff]  ;;  %v249_v63 = vld [vmem:[#allocation8 + $0xa0] sm:$0xff]  ;;  %v105_v36 = vshrl.u32 %v104_v35, 7 }
  0x44   :  { %426 = vmatprep.subr.bf16.mxu0 %v425_v21  ;;  %v443_v54 = vpack.c.bf16 %v100_v53, %v98_v52  ;;  %v68_v55 = vld [vmem:[#allocation3] sm:$0xff]  ;;  %v248_v58 = vld [vmem:[#allocation8 + $0x98] sm:$0xff]  ;;  %v250_v1 = vld [vmem:[#allocation8 + $0xa8] sm:$0xff] }
  0x45   :  { %v247_v57 = vld [vmem:[#allocation8 + $0x90] sm:$0xff]  ;;  %v232_v61 = vld [vmem:[#allocation8 + $0x18] sm:$0xff]  ;;  %v453_v2 = vpack.c.bf16 %v250_v1, %v249_v63  ;;  %v233_v3 = vld [vmem:[#allocation8 + $0x20] sm:$0xff]  ;;  %v106_v37 = vsub.s32 0, %v105_v36 }
  0x46   :  { %v449_v59 = vpack.c.bf16 %v248_v58, %v247_v57  ;;  %v231_v60 = vld [vmem:[#allocation8 + $0x10] sm:$0xff]  ;;  %v234_v4 = vld [vmem:[#allocation8 + $0x28] sm:$0xff]  ;;  %v236_v9 = vld [vmem:[#allocation8 + $0x38] sm:$0xff] }
  0x47   :  { %428 = vmatpush1.bf16.msra.mxu0 %v427_v28  ;;  %v451_v62 = vpack.c.bf16 %v232_v61, %v231_v60  ;;  %v455_v5 = vpack.c.bf16 %v234_v4, %v233_v3  ;;  %v251_v6 = vld [vmem:[#allocation8 + $0xb0] sm:$0xff]  ;;  %v253_v11 = vld [vmem:[#allocation8 + $0xc0] sm:$0xff]  ;;  %v254_v12 = vld [vmem:[#allocation8 + $0xc8] sm:$0xff] }
  0x48   :  { %430 = vmatprep.subr.bf16.mxu0 %v429_v32  ;;  %450 = vmatprep.subr.bf16.mxu1 %v449_v59  ;;  %v235_v8 = vld [vmem:[#allocation8 + $0x30] sm:$0xff]  ;;  %v237_v13 = vld [vmem:[#allocation8 + $0x40] sm:$0xff]  ;;  %v461_v14 = vpack.c.bf16 %v254_v12, %v253_v11  ;;  %v238_v15 = vld [vmem:[#allocation8 + $0x48] sm:$0xff] }
  0x49   :  { %452 = vmatpush3.bf16.msra.mxu1 %v451_v62  ;;  %v459_v10 = vpack.c.bf16 %v236_v9, %v235_v8  ;;  %v255_v16 = vld [vmem:[#allocation8 + $0xd0] sm:$0xff]  ;;  %v256_v17 = vld [vmem:[#allocation8 + $0xd8] sm:$0xff]  ;;  %v463_v18 = vpack.c.bf16 %v238_v15, %v237_v13  ;;  %v257_v22 = vld [vmem:[#allocation8 + $0xe0] sm:$0xff] }
  0x4a   :  { %454 = vmatprep.subr.bf16.mxu1 %v453_v2  ;;  %v465_v19 = vpack.c.bf16 %v256_v17, %v255_v16  ;;  %v239_v20 = vld [vmem:[#allocation8 + $0x50] sm:$0xff]  ;;  %v240_v21 = vld [vmem:[#allocation8 + $0x58] sm:$0xff]  ;;  %v258_v23 = vld [vmem:[#allocation8 + $0xe8] sm:$0xff] }
  0x4b   :  { %432 = vmatpush1.bf16.msra.mxu0 %v431_v38  ;;  %v467_v24 = vpack.c.bf16 %v240_v21, %v239_v20  ;;  %v469_v25 = vpack.c.bf16 %v258_v23, %v257_v22  ;;  %v241_v26 = vld [vmem:[#allocation8 + $0x60] sm:$0xff]  ;;  %v242_v27 = vld [vmem:[#allocation8 + $0x68] sm:$0xff]  ;;  %v259_v28 = vld [vmem:[#allocation8 + $0xf0] sm:$0xff] }
  0x4c   :  { %434 = vmatprep.subr.bf16.mxu0 %v433_v39  ;;  %v260_v29 = vld [vmem:[#allocation8 + $0xf8] sm:$0xff]  ;;  %v471_v30 = vpack.c.bf16 %v242_v27, %v241_v26  ;;  %v243_v32 = vld [vmem:[#allocation8 + $0x70] sm:$0xff]  ;;  %v110_v39 = vsub.s32 1, %v105_v36 }
  0x4d   :  { %456 = vmatpush3.bf16.msra.mxu1 %v455_v5  ;;  %v473_v31 = vpack.c.bf16 %v260_v29, %v259_v28  ;;  %v244_v33 = vld [vmem:[#allocation8 + $0x78] sm:$0xff]  ;;  %v102_v38 = vld [vmem:[%s694_s2] sm:$0x3] }
  0x4e   :  { %v475_v34 = vpack.c.bf16 %v244_v33, %v243_v32  ;;  %v107_v40 = vrot.slane %v102_v38, %v106_v37  ;;  %v111_v41 = vrot.slane %v102_v38, %v110_v39 }
  0x4f   :  { %436 = vmatpush1.bf16.msra.mxu0 %v435_v44 }
  0x50   :  { %438 = vmatprep.subr.bf16.mxu0 %v437_v45 }
  0x53   :  { %440 = vmatpush1.bf16.msra.mxu0 %v439_v50 }
  0x54   :  { %442 = vmatprep.subr.bf16.mxu0 %v441_v51 }
  0x57   :  { %444 = vmatpush1.bf16.msra.mxu0 %v443_v54 }
  0x5a   :  { %179 = vmatmul.mubr.f32.vlgmr.msra.gmra.mrb[0].mxu0 %v68_v55 }
  0x5b   :  { %184 = vmatprep.mubr.f32.mxu0 %v595_v0  ;;  %v252_v0 = vld [vmem:[#allocation8 + $0xb8] sm:$0xff] }
  0x5c   :  { %v457_v7 = vpack.c.bf16 %v252_v0, %v251_v6 }
  0x5e   :  { %185 = vmatmul.mubr.f32.gmra.mrb[2].mxu0 %v69_v56  ;;  %458 = vmatprep.subr.bf16.mxu1 %v457_v7 }
  0x5f   :  { %460 = vmatpush3.bf16.msra.mxu1 %v459_v10 }
  0x60   :  { %462 = vmatprep.subr.bf16.mxu1 %v461_v14 }
  0x63   :  { %464 = vmatpush3.bf16.msra.mxu1 %v463_v18 }
  0x64   :  { %466 = vmatprep.subr.bf16.mxu1 %v465_v19 }
  0x67   :  { %468 = vmatpush3.bf16.msra.mxu1 %v467_v24  ;;  %v374_v24 = vld [vmem:[%s696_s4] ss:$0 sm:$0xff] }
  0x68   :  { %470 = vmatprep.subr.bf16.mxu1 %v469_v25 }
  0x6b   :  { %472 = vmatpush3.bf16.msra.mxu1 %v471_v30 }
  0x6c   :  { %474 = vmatprep.subr.bf16.mxu1 %v473_v31 }
  0x6f   :  { %476 = vmatpush3.bf16.msra.mxu1 %v475_v34 }
 0x12d   :  { %v180_v42 = vpop.f32.mrb[0].mxu0 }
 0x12e   :  { %v181_v43 = vadd.f32 %v180_v42, %v107_v40  ;;  %v182_v44 = vpop.f32.mrb[1].mxu0 }
 0x12f   :  { %v183_v45 = vadd.f32 %v182_v44, %v111_v41 }
 0x130   :  { %v195_v46 = vmul.f32 0.044715, %v181_v43  ;;  %v191_v11 = vmul.f32 0.5, %v181_v43 }
 0x131   :  { %v186_v47 = vpop.f32.mrb[2].mxu0  ;;  %v196_v48 = vmul.f32 0.044715, %v183_v45  ;;  %v192_v9 = vmul.f32 0.5, %v183_v45 }
 0x132   :  { %v199_v49 = vmul.f32 %v195_v46, %v181_v43  ;;  %v187_v50 = vadd.f32 %v186_v47, %v107_v40  ;;  %v188_v51 = vpop.f32.mrb[3].mxu0 }
 0x133   :  { %v189_v52 = vadd.f32 %v188_v51, %v111_v41  ;;  %v200_v53 = vmul.f32 %v196_v48, %v183_v45 }
 0x134   :  { %v197_v54 = vmul.f32 0.044715, %v187_v50  ;;  %v203_v55 = vmul.f32 %v199_v49, %v181_v43  ;;  %v193_v19 = vmul.f32 0.5, %v187_v50 }
 0x135   :  { %v198_v56 = vmul.f32 0.044715, %v189_v52  ;;  %v204_v57 = vmul.f32 %v200_v53, %v183_v45  ;;  %v194_v17 = vmul.f32 0.5, %v189_v52 }
 0x136   :  { %v201_v58 = vmul.f32 %v197_v54, %v187_v50  ;;  %v207_v59 = vadd.f32 %v203_v55, %v181_v43 }
 0x137   :  { %v202_v60 = vmul.f32 %v198_v56, %v189_v52  ;;  %v208_v61 = vadd.f32 %v204_v57, %v183_v45 }
 0x138   :  { %v211_v62 = vmul.f32 0.7978846, %v207_v59  ;;  %v205_v63 = vmul.f32 %v201_v58, %v187_v50 }
 0x139   :  { %v212_v1 = vmul.f32 0.7978846, %v208_v61  ;;  %v206_v2 = vmul.f32 %v202_v60, %v189_v52 }
 0x13a   :  { %486 = vtanh.f32 %v211_v62  ;;  %v209_v3 = vadd.f32 %v205_v63, %v187_v50 }
 0x13b   :  { %488 = vtanh.f32 %v212_v1  ;;  %v210_v4 = vadd.f32 %v206_v2, %v189_v52 }
 0x13c   :  { %v213_v5 = vmul.f32 0.7978846, %v209_v3 }
 0x13d   :  { %v214_v6 = vmul.f32 0.7978846, %v210_v4 }
 0x13e   :  { %490 = vtanh.f32 %v213_v5 }
 0x13f   :  { %492 = vtanh.f32 %v214_v6 }
 0x144   :  { %v487_v0 = vpop.eup %486 }
 0x145   :  { %v489_v7 = vpop.eup %488  ;;  %v219_v8 = vadd.f32 1.0, %v487_v0 }
 0x146   :  { %v220_v10 = vadd.f32 1.0, %v489_v7 }
 0x147   :  { %v223_v15 = vmul.f32 %v219_v8, %v191_v11 }
 0x148   :  { %v491_v12 = vpop.eup %490  ;;  %v224_v13 = vmul.f32 %v220_v10, %v192_v9 }
 0x149   :  { %v493_v14 = vpop.eup %492  ;;  %v221_v16 = vadd.f32 1.0, %v491_v12 }
 0x14a   :  { %325 = vmatprep.mubr.f32.mxu1 %v224_v13  ;;  %v222_v18 = vadd.f32 1.0, %v493_v14 }
 0x14b   :  { %326 = vmatmul.mubr.f32.vlgmr.msra.gmra.mrb[0].mxu1 %v223_v15  ;;  %v225_v21 = vmul.f32 %v221_v16, %v193_v19 }
 0x14c   :  { %v226_v20 = vmul.f32 %v222_v18, %v194_v17 }
 0x14e   :  { %330 = vmatprep.mubr.f32.mxu1 %v226_v20 }
 0x14f   :  { %331 = vmatmul.mubr.f32.gmra.mrb[2].mxu1 %v225_v21 }
 0x21e   :  { %v407_v22 = vpop.f32.mrb[0].mxu1 }
 0x21f   :  { %v408_v23 = vpop.f32.mrb[1].mxu1 }
 0x220   :  { %v409_v25 = vadd.f32 %v408_v23, %v407_v22 }
 0x222   :  { %v352_v26 = vadd.f32 %v409_v25, %v374_v24  ;;  %v410_v27 = vpop.f32.mrb[2].mxu1 }
 0x223   :  { %v411_v28 = vpop.f32.mrb[3].mxu1 }
 0x224   :  { %354 = vst [vmem:[#allocation9] sm:$0xff] %v352_v26  ;;  %v412_v29 = vadd.f32 %v411_v28, %v410_v27 }
 0x226   :  { %v353_v30 = vadd.f32 %v412_v29, %v374_v24 }
 0x228   :  { %355 = vst [vmem:[#allocation9 + $0x8] sm:$0xff] %v353_v30 }
 0x229   :  { %571 = shalt.err (!%p568_p0)
}
 0x22a   :  { %s572_s12 = scalar_lea.hbm %s697_s5, 256 }
 0x22b   :  { %p573_p1 = scmp.ne.s32.totalorder %s697_s5, %s572_s12  ;;  %p576_p2 = scmp.lt.u32.totalorder %s572_s12, %s697_s5 }
 0x22d   :  { %p578_p3 = pnand %p576_p2, %p573_p1 }
 0x22f   :  { %581 = shalt.err (!%p578_p3)
}
 0x230   :  { %367 = dma.vmem_to_hbm [thread:$0]  %s362_s9, 256, %s697_s5, [#allocation5], %s592_s1, %s592_s1, %s593_s17  }
 0x231   :  { %586 = dma.done.wait [#allocation5], 256  }
 0x232   :  { %587 = vsyncadd [#allocation5], 4294967040 }
 0x233   :  { %371 = vsyncpa [#allocation4], 1 }
 0x234   :  { %372 = vsyncpa [#allocation7], 1 }
 0x235   :  { %373 = vsyncpa [#allocation5], 1 }

</bundles_post_ra>
